<compile_context>
chip_gen: v7x
topology: tpu7x:2x2x1
jax: 0.10.0
libtpu: 0.0.40
codegen_flags: <defaults>
</compile_context>

<pallas_src>
import math

import jax
import jax.numpy as jnp
from jax import lax
from jax.experimental import pallas as pl
from jax.experimental.pallas import tpu as pltpu


def _s4d_fused_kernel(fm_ref, fl_ref, mask_ref, u_ref, w_ref, b_ref,
                      y_ref, v_scr):
    """Grid = (n_col, H).

    Axis 0 tiles the output sequence columns ("parallel": feeds both v7x
    TensorCores); axis 1 runs over SSM channels ("arbitrary": reduction for the
    1x1 channel mix).

    Per step (c, h):
      1. Tt = F_M[h] @ F_L[h, c]^T      single K=2*n2 MXU matmul  -> (Lp, TL)
      2. Tt *= causal mask              (precomputed, h-invariant input)
      3. V_h = U[h] @ Tt                (B, TL) MXU matmul
      4. stash V_h in VMEM scratch; at h == H-1 apply the 1x1 Conv1d channel
         mix + bias and write the (H, B, TL) output block exactly once.
    """
    h = pl.program_id(1)
    H = y_ref.shape[0]
    B = y_ref.shape[1]
    TL = y_ref.shape[2]

    # Tt[m, l] = sum_k F_M[m, k] * F_L[l, k]  == 2*Re(C' e^{dtA (l-m)}) = K[l-m]
    nt = (((1,), (1,)), ((), ()))            # contract the state axis (NT matmul)
    tt = lax.dot_general(fm_ref[0], fl_ref[0], nt,
                         preferred_element_type=jnp.float32)       # (Lp, TL)
    tt = (tt * mask_ref[...]).astype(u_ref.dtype)                  # causal mask

    # Causal SSM convolution for the whole batch on the MXU.
    v_scr[h] = jnp.dot(u_ref[0], tt,
                       preferred_element_type=jnp.float32)         # (B, TL)

    # 1x1 Conv1d channel mix, applied once per column block (write-once output).
    @pl.when(h == H - 1)
    def _finalize():
        for o in range(H):                                         # H == 3, unrolled
            acc = jnp.full((B, TL), b_ref[o], jnp.float32)
            for hh in range(H):
                acc = acc + w_ref[o, hh] * v_scr[hh]
            y_ref[o] = acc


def _pick_col_block(lp):
    """Largest multiple-of-128 column block that divides Lp, leaves >= 2 blocks
    (so the leading 'parallel' axis can feed both v7x TensorCores) and is
    capped at 1024 lanes.  Falls back to one full-width block for tiny Lp."""
    q = lp // 128
    if q >= 2:
        for t in range(min(q // 2, 8), 0, -1):
            if q % t == 0:
                return 128 * t
    return lp


def s4d_simple_forward(u, params, compute_dtype=jnp.float32):
    """u: (B, H, L) float32.  Returns (y, None) with y: (B, H, L) float32.

    compute_dtype: dtype of the MXU operands (F_M, F_L, u). jnp.bfloat16 is
    ~2-3x faster on v6e/v7x's bf16-native MXU; validate against the accuracy
    tolerance before enabling (accumulation stays f32 either way).
    """
    B, H, L = u.shape
    n2 = params["A_imag"].shape[1]
    Lp = ((L + 127) // 128) * 128          # lane-dense padded sequence length
    TL = _pick_col_block(Lp)               # output column block (parallel axis)
    n_col = Lp // TL
    K2 = 2 * n2

    # ---- parameter preprocessing (tiny, h-invariant; keeps EUP work and the
    # ---- 2x scale off the kernel's per-step path) -----------------------------
    dt = jnp.exp(params["log_dt"])                               # (H,)
    A = -jnp.exp(params["log_A_real"]) + 1j * params["A_imag"]   # (H, n2) complex
    dtA = A * dt[:, None]
    Cp = 2.0 * params["C"] * (jnp.exp(dtA) - 1.0) / A            # 2x folded into C'

    # Rank-(2*n2) factors of the transposed causal Toeplitz operator.
    pos = jnp.arange(Lp, dtype=jnp.float32)
    e_pos = jnp.exp(dtA[:, None, :] * pos[None, :, None])        # (H, Lp, n2) cplx
    e_neg = jnp.exp(-dtA[:, None, :] * pos[None, :, None])       # (H, Lp, n2) cplx
    # TODO(synk): e^{-Re(dtA)*m} can overflow for very large |Re(dtA)|*L; for
    # long sequences tile the m axis flash-conv style and shift the exponent
    # per tile (also skips the strictly-upper-triangular tiles).
    cl = Cp[:, None, :] * e_pos
    f_l = jnp.concatenate([jnp.real(cl), -jnp.imag(cl)], axis=-1)        # (H, Lp, 2*n2)
    f_m = jnp.concatenate([jnp.real(e_neg), jnp.imag(e_neg)], axis=-1)   # (H, Lp, 2*n2)
    f_l = f_l.astype(compute_dtype)
    f_m = f_m.astype(compute_dtype)

    # h-invariant causal mask, built once and streamed with a constant index_map.
    mask = (jnp.arange(Lp, dtype=jnp.int32)[:, None]
            <= jnp.arange(Lp, dtype=jnp.int32)[None, :]).astype(jnp.float32)

    W = params["conv_w"].astype(jnp.float32)                     # (H, H)
    bvec = params["conv_b"].astype(jnp.float32)                  # (H,)

    # (H, B, Lp): per-channel blocks, zero-padded sequence (padding contributes
    # nothing to the causal conv).
    u_t = jnp.pad(jnp.transpose(u, (1, 0, 2)).astype(compute_dtype),
                  ((0, 0), (0, 0), (0, Lp - L)))

    y_t = pl.pallas_call(
        _s4d_fused_kernel,
        grid=(n_col, H),
        in_specs=[
            pl.BlockSpec((1, Lp, K2), lambda c, h: (h, 0, 0)),   # F_M (m side)
            pl.BlockSpec((1, TL, K2), lambda c, h: (h, c, 0)),   # F_L (l side, col blk)
            pl.BlockSpec((Lp, TL), lambda c, h: (0, c)),         # causal mask
            pl.BlockSpec((1, B, Lp), lambda c, h: (h, 0, 0)),    # u, per channel
            pl.BlockSpec(memory_space=pltpu.MemorySpace.SMEM),   # conv 1x1 weight
            pl.BlockSpec(memory_space=pltpu.MemorySpace.SMEM),   # conv 1x1 bias
        ],
        out_specs=pl.BlockSpec((H, B, TL), lambda c, h: (0, 0, c)),
        out_shape=jax.ShapeDtypeStruct((H, B, Lp), jnp.float32),
        scratch_shapes=[pltpu.VMEM((H, B, TL), jnp.float32)],    # per-channel V stash
        compiler_params=pltpu.CompilerParams(
            dimension_semantics=("parallel", "arbitrary"),
            vmem_limit_bytes=64 * 1024 * 1024,
        ),
    )(f_m, f_l, mask, u_t, W, bvec)

    y = jnp.transpose(y_t, (1, 0, 2))[:, :, :L]
    return y, None


def reference_forward(u, params):
    """Pure-JAX replica of the PyTorch forward (FFT path) for verification."""
    B, H, L = u.shape
    dt = jnp.exp(params["log_dt"])
    A = -jnp.exp(params["log_A_real"]) + 1j * params["A_imag"]
    dtA = A * dt[:, None]
    K = dtA[:, :, None] * jnp.arange(L)
    Cm = params["C"] * (jnp.exp(dtA) - 1.0) / A
    k = 2.0 * jnp.real(jnp.einsum("hn,hnl->hl", Cm, jnp.exp(K)))
    k = jnp.pad(k, ((0, 0), (0, L)))
    up = jnp.pad(u, ((0, 0), (0, 0), (0, L)))
    kf = jnp.fft.fft(k)
    uf = jnp.fft.fft(up)
    scales = jnp.ones((H, L), jnp.float32)          # beta == 0  =>  all ones
    scales = jnp.concatenate([scales, scales[:, ::-1]], axis=1)
    kf = kf * scales
    y = jnp.real(jnp.fft.ifft(uf * kf))[..., :L]
    y = jnp.einsum("oh,bhl->bol", params["conv_w"], y) + params["conv_b"][None, :, None]
    return y


if __name__ == "__main__":
    key = jax.random.PRNGKey(0)
    B, L = 2, 16
    d_model = 3          # H (hard-coded to 3 in the PyTorch module)
    d_state = 128        # N
    n2 = d_state // 2

    k_cre, k_cim, k_w, k_b, k_u = jax.random.split(key, 5)

    H = d_model
    # log_dt: rand * (log(1e-4) - log(1e-4)) + log(1e-4) == log(1e-4) exactly
    log_dt = jnp.full((H,), math.log(1e-4), dtype=jnp.float32)
    A_imag = jnp.tile(jnp.arange(n2, dtype=jnp.float32)[None, :] * math.pi, (H, 1))
    A_imag = A_imag.at[:, 0].set(0.0)
    log_A_real = jnp.log(3.0 * jnp.ones((H, n2), dtype=jnp.float32))
    log_A_real = log_A_real.at[:, 0].set(-5.0)
    # torch.randn(..., cfloat): real/imag each ~ N(0, 1/2)
    c_re = jax.random.normal(k_cre, (H, n2), dtype=jnp.float32) / jnp.sqrt(2.0)
    c_im = jax.random.normal(k_cim, (H, n2), dtype=jnp.float32) / jnp.sqrt(2.0)
    C = ((c_re + 1j * c_im) * jnp.abs(A_imag) / 1000.0).astype(jnp.complex64)

    # nn.Conv1d(3, 3, kernel_size=1) default init: U(-1/sqrt(fan_in), 1/sqrt(fan_in))
    bound = 1.0 / math.sqrt(d_model * 1)
    conv_w = jax.random.uniform(k_w, (d_model, d_model), jnp.float32, -bound, bound)
    conv_b = jax.random.uniform(k_b, (d_model,), jnp.float32, -bound, bound)

    params = dict(log_dt=log_dt, log_A_real=log_A_real, A_imag=A_imag, C=C,
                  conv_w=conv_w, conv_b=conv_b)

    u = jax.random.normal(k_u, (B, d_model, L), dtype=jnp.float32)

    y, _ = s4d_simple_forward(u, params)
    y = jax.block_until_ready(y)

    y_ref = jax.block_until_ready(reference_forward(u, params))
    assert y.shape == (B, d_model, L)
    assert bool(jnp.allclose(y, y_ref, atol=1e-4, rtol=1e-3)), "mismatch vs FFT reference"

    print("KERNEL_OK")
</pallas_src>

<mosaic_0001>
module attributes {stable_mosaic.version = 11 : i64} {
  func.func @_s4d_fused_kernel(%arg0: i32, %arg1: i32, %arg2: memref<1x128x128xf32, #tpu.memory_space<vmem>>, %arg3: memref<1x128x128xf32, #tpu.memory_space<vmem>>, %arg4: memref<128x128xf32, #tpu.memory_space<vmem>>, %arg5: memref<1x2x128xf32, #tpu.memory_space<vmem>>, %arg6: memref<3x3xf32, #tpu.memory_space<smem>>, %arg7: memref<3xf32, #tpu.memory_space<smem>>, %arg8: memref<3x2x128xf32, #tpu.memory_space<vmem>>, %arg9: memref<3x2x128xf32, #tpu.memory_space<vmem>>) attributes {dimension_semantics = [#tpu.dimension_semantics<parallel>, #tpu.dimension_semantics<arbitrary>], iteration_bounds = array<i64: 1, 3>, scalar_prefetch = 0 : i64, scratch_operands = 1 : i64, tpu.core_type = #tpu.core_type<tc>, window_params = [{transform_indices = @transform_0, window_bounds = array<i64: 1, 128, 128>}, {transform_indices = @transform_1, window_bounds = array<i64: 1, 128, 128>}, {transform_indices = @transform_2, window_bounds = array<i64: 128, 128>}, {transform_indices = @transform_3, window_bounds = array<i64: 1, 2, 128>}, {transform_indices = @transform_4, window_bounds = array<i64: 3, 3>}, {transform_indices = @transform_5, window_bounds = array<i64: 3>}, {transform_indices = @transform_6, window_bounds = array<i64: 3, 2, 128>}]} {
    %c0 = arith.constant 0 : index
    %c0_0 = arith.constant 0 : index
    %c0_1 = arith.constant 0 : index
    %0 = vector.load %arg2[%c0, %c0_0, %c0_1] : memref<1x128x128xf32, #tpu.memory_space<vmem>>, vector<1x128x128xf32>
    %1 = vector.shape_cast %0 : vector<1x128x128xf32> to vector<128x128xf32>
    %c0_2 = arith.constant 0 : index
    %c0_3 = arith.constant 0 : index
    %c0_4 = arith.constant 0 : index
    %2 = vector.load %arg3[%c0_2, %c0_3, %c0_4] : memref<1x128x128xf32, #tpu.memory_space<vmem>>, vector<1x128x128xf32>
    %3 = vector.shape_cast %2 : vector<1x128x128xf32> to vector<128x128xf32>
    %cst = arith.constant dense<0.000000e+00> : vector<128x128xf32>
    %4 = tpu.matmul %1, %3, %cst {dimension_numbers = #tpu.dot_dimension_numbers<[1], [1], [0], [0], [0, 0, 1, 0], [], []>} : vector<128x128xf32>, vector<128x128xf32>, vector<128x128xf32> -> vector<128x128xf32>
    %c0_5 = arith.constant 0 : index
    %c0_6 = arith.constant 0 : index
    %5 = vector.load %arg4[%c0_5, %c0_6] : memref<128x128xf32, #tpu.memory_space<vmem>>, vector<128x128xf32>
    %6 = arith.mulf %4, %5 : vector<128x128xf32>
    %c0_7 = arith.constant 0 : index
    %c0_8 = arith.constant 0 : index
    %c0_9 = arith.constant 0 : index
    %7 = vector.load %arg5[%c0_7, %c0_8, %c0_9] : memref<1x2x128xf32, #tpu.memory_space<vmem>>, vector<1x2x128xf32>
    %8 = vector.shape_cast %7 : vector<1x2x128xf32> to vector<2x128xf32>
    %cst_10 = arith.constant dense<0.000000e+00> : vector<2x128xf32>
    %9 = tpu.matmul %8, %6, %cst_10 {dimension_numbers = #tpu.dot_dimension_numbers<[1], [0], [0], [1], [0, 0, 1, 1], [], []>} : vector<2x128xf32>, vector<128x128xf32>, vector<2x128xf32> -> vector<2x128xf32>
    %10 = arith.index_cast %arg1 : i32 to index
    %c0_11 = arith.constant 0 : index
    %c0_12 = arith.constant 0 : index
    %11 = vector.load %arg9[%10, %c0_11, %c0_12] : memref<3x2x128xf32, #tpu.memory_space<vmem>>, vector<1x2x128xf32>
    %12 = vector.shape_cast %11 : vector<1x2x128xf32> to vector<2x128xf32>
    %13 = vector.shape_cast %9 : vector<2x128xf32> to vector<1x2x128xf32>
    tpu.vector_store %arg9[%10, %c0_11, %c0_12], %13 {strides = array<i32>} : memref<3x2x128xf32, #tpu.memory_space<vmem>>, vector<1x2x128xf32>,
    %c2_i32 = arith.constant 2 : i32
    %14 = arith.cmpi eq, %arg1, %c2_i32 : i32
    %15 = arith.extui %14 : i1 to i32
    %c0_i32 = arith.constant 0 : i32
    %16 = arith.cmpi ne, %15, %c0_i32 : i32
    scf.if %16 {
      %c0_13 = arith.constant 0 : index
      %17 = memref.load %arg7[%c0_13] : memref<3xf32, #tpu.memory_space<smem>>
      %18 = vector.broadcast %17 : f32 to vector<2x128xf32>
      %c0_14 = arith.constant 0 : index
      %c0_15 = arith.constant 0 : index
      %19 = memref.load %arg6[%c0_14, %c0_15] : memref<3x3xf32, #tpu.memory_space<smem>>
      %c0_16 = arith.constant 0 : index
      %c0_17 = arith.constant 0 : index
      %c0_18 = arith.constant 0 : index
      %20 = vector.load %arg9[%c0_16, %c0_17, %c0_18] : memref<3x2x128xf32, #tpu.memory_space<vmem>>, vector<1x2x128xf32>
      %21 = vector.shape_cast %20 : vector<1x2x128xf32> to vector<2x128xf32>
      %22 = vector.broadcast %19 : f32 to vector<2x128xf32>
      %23 = arith.mulf %22, %21 : vector<2x128xf32>
      %24 = arith.addf %18, %23 : vector<2x128xf32>
      %c0_19 = arith.constant 0 : index
      %c1 = arith.constant 1 : index
      %25 = memref.load %arg6[%c0_19, %c1] : memref<3x3xf32, #tpu.memory_space<smem>>
      %c1_20 = arith.constant 1 : index
      %c0_21 = arith.constant 0 : index
      %c0_22 = arith.constant 0 : index
      %26 = vector.load %arg9[%c1_20, %c0_21, %c0_22] : memref<3x2x128xf32, #tpu.memory_space<vmem>>, vector<1x2x128xf32>
      %27 = vector.shape_cast %26 : vector<1x2x128xf32> to vector<2x128xf32>
      %28 = vector.broadcast %25 : f32 to vector<2x128xf32>
      %29 = arith.mulf %28, %27 : vector<2x128xf32>
      %30 = arith.addf %24, %29 : vector<2x128xf32>
      %c0_23 = arith.constant 0 : index
      %c2 = arith.constant 2 : index
      %31 = memref.load %arg6[%c0_23, %c2] : memref<3x3xf32, #tpu.memory_space<smem>>
      %c2_24 = arith.constant 2 : index
      %c0_25 = arith.constant 0 : index
      %c0_26 = arith.constant 0 : index
      %32 = vector.load %arg9[%c2_24, %c0_25, %c0_26] : memref<3x2x128xf32, #tpu.memory_space<vmem>>, vector<1x2x128xf32>
      %33 = vector.shape_cast %32 : vector<1x2x128xf32> to vector<2x128xf32>
      %34 = vector.broadcast %31 : f32 to vector<2x128xf32>
      %35 = arith.mulf %34, %33 : vector<2x128xf32>
      %36 = arith.addf %30, %35 : vector<2x128xf32>
      %c0_27 = arith.constant 0 : index
      %c0_28 = arith.constant 0 : index
      %c0_29 = arith.constant 0 : index
      %37 = vector.load %arg8[%c0_27, %c0_28, %c0_29] : memref<3x2x128xf32, #tpu.memory_space<vmem>>, vector<1x2x128xf32>
      %38 = vector.shape_cast %37 : vector<1x2x128xf32> to vector<2x128xf32>
      %39 = vector.shape_cast %36 : vector<2x128xf32> to vector<1x2x128xf32>
      tpu.vector_store %arg8[%c0_27, %c0_28, %c0_29], %39 {strides = array<i32>} : memref<3x2x128xf32, #tpu.memory_space<vmem>>, vector<1x2x128xf32>,
      %c1_30 = arith.constant 1 : index
      %40 = memref.load %arg7[%c1_30] : memref<3xf32, #tpu.memory_space<smem>>
      %41 = vector.broadcast %40 : f32 to vector<2x128xf32>
      %c1_31 = arith.constant 1 : index
      %c0_32 = arith.constant 0 : index
      %42 = memref.load %arg6[%c1_31, %c0_32] : memref<3x3xf32, #tpu.memory_space<smem>>
      %c0_33 = arith.constant 0 : index
      %c0_34 = arith.constant 0 : index
      %c0_35 = arith.constant 0 : index
      %43 = vector.load %arg9[%c0_33, %c0_34, %c0_35] : memref<3x2x128xf32, #tpu.memory_space<vmem>>, vector<1x2x128xf32>
      %44 = vector.shape_cast %43 : vector<1x2x128xf32> to vector<2x128xf32>
      %45 = vector.broadcast %42 : f32 to vector<2x128xf32>
      %46 = arith.mulf %45, %44 : vector<2x128xf32>
      %47 = arith.addf %41, %46 : vector<2x128xf32>
      %c1_36 = arith.constant 1 : index
      %c1_37 = arith.constant 1 : index
      %48 = memref.load %arg6[%c1_36, %c1_37] : memref<3x3xf32, #tpu.memory_space<smem>>
      %c1_38 = arith.constant 1 : index
      %c0_39 = arith.constant 0 : index
      %c0_40 = arith.constant 0 : index
      %49 = vector.load %arg9[%c1_38, %c0_39, %c0_40] : memref<3x2x128xf32, #tpu.memory_space<vmem>>, vector<1x2x128xf32>
      %50 = vector.shape_cast %49 : vector<1x2x128xf32> to vector<2x128xf32>
      %51 = vector.broadcast %48 : f32 to vector<2x128xf32>
      %52 = arith.mulf %51, %50 : vector<2x128xf32>
      %53 = arith.addf %47, %52 : vector<2x128xf32>
      %c1_41 = arith.constant 1 : index
      %c2_42 = arith.constant 2 : index
      %54 = memref.load %arg6[%c1_41, %c2_42] : memref<3x3xf32, #tpu.memory_space<smem>>
      %c2_43 = arith.constant 2 : index
      %c0_44 = arith.constant 0 : index
      %c0_45 = arith.constant 0 : index
      %55 = vector.load %arg9[%c2_43, %c0_44, %c0_45] : memref<3x2x128xf32, #tpu.memory_space<vmem>>, vector<1x2x128xf32>
      %56 = vector.shape_cast %55 : vector<1x2x128xf32> to vector<2x128xf32>
      %57 = vector.broadcast %54 : f32 to vector<2x128xf32>
      %58 = arith.mulf %57, %56 : vector<2x128xf32>
      %59 = arith.addf %53, %58 : vector<2x128xf32>
      %c1_46 = arith.constant 1 : index
      %c0_47 = arith.constant 0 : index
      %c0_48 = arith.constant 0 : index
      %60 = vector.load %arg8[%c1_46, %c0_47, %c0_48] : memref<3x2x128xf32, #tpu.memory_space<vmem>>, vector<1x2x128xf32>
      %61 = vector.shape_cast %60 : vector<1x2x128xf32> to vector<2x128xf32>
      %62 = vector.shape_cast %59 : vector<2x128xf32> to vector<1x2x128xf32>
      tpu.vector_store %arg8[%c1_46, %c0_47, %c0_48], %62 {strides = array<i32>} : memref<3x2x128xf32, #tpu.memory_space<vmem>>, vector<1x2x128xf32>,
      %c2_49 = arith.constant 2 : index
      %63 = memref.load %arg7[%c2_49] : memref<3xf32, #tpu.memory_space<smem>>
      %64 = vector.broadcast %63 : f32 to vector<2x128xf32>
      %c2_50 = arith.constant 2 : index
      %c0_51 = arith.constant 0 : index
      %65 = memref.load %arg6[%c2_50, %c0_51] : memref<3x3xf32, #tpu.memory_space<smem>>
      %c0_52 = arith.constant 0 : index
      %c0_53 = arith.constant 0 : index
      %c0_54 = arith.constant 0 : index
      %66 = vector.load %arg9[%c0_52, %c0_53, %c0_54] : memref<3x2x128xf32, #tpu.memory_space<vmem>>, vector<1x2x128xf32>
      %67 = vector.shape_cast %66 : vector<1x2x128xf32> to vector<2x128xf32>
      %68 = vector.broadcast %65 : f32 to vector<2x128xf32>
      %69 = arith.mulf %68, %67 : vector<2x128xf32>
      %70 = arith.addf %64, %69 : vector<2x128xf32>
      %c2_55 = arith.constant 2 : index
      %c1_56 = arith.constant 1 : index
      %71 = memref.load %arg6[%c2_55, %c1_56] : memref<3x3xf32, #tpu.memory_space<smem>>
      %c1_57 = arith.constant 1 : index
      %c0_58 = arith.constant 0 : index
      %c0_59 = arith.constant 0 : index
      %72 = vector.load %arg9[%c1_57, %c0_58, %c0_59] : memref<3x2x128xf32, #tpu.memory_space<vmem>>, vector<1x2x128xf32>
      %73 = vector.shape_cast %72 : vector<1x2x128xf32> to vector<2x128xf32>
      %74 = vector.broadcast %71 : f32 to vector<2x128xf32>
      %75 = arith.mulf %74, %73 : vector<2x128xf32>
      %76 = arith.addf %70, %75 : vector<2x128xf32>
      %c2_60 = arith.constant 2 : index
      %c2_61 = arith.constant 2 : index
      %77 = memref.load %arg6[%c2_60, %c2_61] : memref<3x3xf32, #tpu.memory_space<smem>>
      %c2_62 = arith.constant 2 : index
      %c0_63 = arith.constant 0 : index
      %c0_64 = arith.constant 0 : index
      %78 = vector.load %arg9[%c2_62, %c0_63, %c0_64] : memref<3x2x128xf32, #tpu.memory_space<vmem>>, vector<1x2x128xf32>
      %79 = vector.shape_cast %78 : vector<1x2x128xf32> to vector<2x128xf32>
      %80 = vector.broadcast %77 : f32 to vector<2x128xf32>
      %81 = arith.mulf %80, %79 : vector<2x128xf32>
      %82 = arith.addf %76, %81 : vector<2x128xf32>
      %c2_65 = arith.constant 2 : index
      %c0_66 = arith.constant 0 : index
      %c0_67 = arith.constant 0 : index
      %83 = vector.load %arg8[%c2_65, %c0_66, %c0_67] : memref<3x2x128xf32, #tpu.memory_space<vmem>>, vector<1x2x128xf32>
      %84 = vector.shape_cast %83 : vector<1x2x128xf32> to vector<2x128xf32>
      %85 = vector.shape_cast %82 : vector<2x128xf32> to vector<1x2x128xf32>
      tpu.vector_store %arg8[%c2_65, %c0_66, %c0_67], %85 {strides = array<i32>} : memref<3x2x128xf32, #tpu.memory_space<vmem>>, vector<1x2x128xf32>,
    } else {
    }
    return
  }
  func.func @transform_0(%arg0: i32, %arg1: i32) -> (i32, i32, i32) {
    %c0_i32 = arith.constant 0 : i32
    %c0_i32_0 = arith.constant 0 : i32
    %c0_i32_1 = arith.constant 0 : i32
    return %arg1, %c0_i32, %c0_i32_0 : i32, i32, i32
  }
  func.func @transform_1(%arg0: i32, %arg1: i32) -> (i32, i32, i32) {
    %c0_i32 = arith.constant 0 : i32
    %c0_i32_0 = arith.constant 0 : i32
    return %arg1, %arg0, %c0_i32 : i32, i32, i32
  }
  func.func @transform_2(%arg0: i32, %arg1: i32) -> (i32, i32) {
    %c0_i32 = arith.constant 0 : i32
    %c0_i32_0 = arith.constant 0 : i32
    return %c0_i32, %arg0 : i32, i32
  }
  func.func @transform_3(%arg0: i32, %arg1: i32) -> (i32, i32, i32) {
    %c0_i32 = arith.constant 0 : i32
    %c0_i32_0 = arith.constant 0 : i32
    %c0_i32_1 = arith.constant 0 : i32
    return %arg1, %c0_i32, %c0_i32_0 : i32, i32, i32
  }
  func.func @transform_4(%arg0: i32, %arg1: i32) -> (i32, i32) {
    %c0_i32 = arith.constant 0 : i32
    %c0_i32_0 = arith.constant 0 : i32
    %c0_i32_1 = arith.constant 0 : i32
    return %c0_i32, %c0_i32_0 : i32, i32
  }
  func.func @transform_5(%arg0: i32, %arg1: i32) -> i32 {
    %c0_i32 = arith.constant 0 : i32
    %c0_i32_0 = arith.constant 0 : i32
    return %c0_i32 : i32
  }
  func.func @transform_6(%arg0: i32, %arg1: i32) -> (i32, i32, i32) {
    %c0_i32 = arith.constant 0 : i32
    %c0_i32_0 = arith.constant 0 : i32
    %c0_i32_1 = arith.constant 0 : i32
    return %c0_i32, %c0_i32_0, %arg0 : i32, i32, i32
  }
}

</mosaic_0001>

<bundles_post_ra>
// kernel: tpu_custom_call.1
= control target key start
LH: loop header
LB: loop body
LE: loop exit
PB: predicated region body
PF: predicated region fallthrough
CT: control target
= control target key end

     0   :  { %s1917_s0 = inlined_call_operand.hbm [shape: f32[3,128,128], index: 0, kind: input, shape index: {}]   ;;  %s1918_s1 = inlined_call_operand.hbm [shape: f32[3,128,128], index: 1, kind: input, shape index: {}]   ;;  %s1919_s2 = inlined_call_operand.hbm [shape: f32[128,128], index: 2, kind: input, shape index: {}]   ;;  %s1920_s3 = inlined_call_operand.hbm [shape: f32[3,2,128], index: 3, kind: input, shape index: {}]   ;;  %s1921_s4 = inlined_call_operand.hbm [shape: f32[3,3], index: 4, kind: input, shape index: {}]   ;;  %s1922_s5 = inlined_call_operand.hbm [shape: f32[3], index: 5, kind: input, shape index: {}]   ;;  %s1923_s6 = inlined_call_operand.hbm [shape: f32[3,2,128], index: 6, kind: output, shape index: {}]  }
   0x1   :  { %1934 = sst [smem:[#allocation25_spill]] %s1917_s0 }
   0x2   :  { %1935 = sst [smem:[#allocation26_spill]] %s1919_s2 }
   0x3   :  { %1936 = sst [smem:[#allocation27_spill]] %s1921_s4 }
   0x4   :  { %1937 = sst [smem:[#allocation28_spill]] %s1922_s5 }
   0x5   :  { %11 = vsyncpa [#allocation4], 0 }
   0x6   :  { %13 = vsyncpa [#allocation4 + $0x1], 0 }
   0x7   :  { %14 = vsyncpa [#allocation8], 0 }
   0x8   :  { %16 = vsyncpa [#allocation8 + $0x1], 0 }
   0x9   :  { %17 = vsyncpa [#allocation11], 0 }
   0xa   :  { %19 = vsyncpa [#allocation11 + $0x1], 0 }
   0xb   :  { %20 = vsyncpa [#allocation6], 0 }
   0xc   :  { %21 = vsyncpa [#allocation14], 0 }
   0xd   :  { %22 = vsyncpa [#allocation5], 0  ;;  %s1542_s21 = smov 0   ;;  %s1544_s22 = smov 0  }
   0xe   :  { %s1546_s23 = smov 0   ;;  %s1548_s24 = smov 0  }
   0xf   :  { %s1550_s25 = smov 0   ;;  %s1552_s26 = smov 0  }
  0x10 LB: > { %s1571_s27 = sadd.s32 4294967295, %s1491_s26   ;;  %s47_s28 = sadd.s32 1, %s1479_s23  ;;  %s1491_s26 = sphi %s1552_s26, %s28_s26   ;;  %s1487_s25 = sphi %s1550_s25, %s1970_s25   ;;  %s1483_s24 = sphi %s1548_s24, %s1969_s24   ;;  %s1479_s23 = sphi %s1546_s23, %s1968_s23   ;;  %s1475_s22 = sphi %s1544_s22, %s1967_s22   ;;  %s1471_s21 = sphi %s1542_s21, %s1966_s21  }
  0x11   : > { %p54_p0 = scmp.ne.s32.totalorder %s1479_s23, %s1475_s22  ;;  %p55_p1 = scmp.eq.s32.totalorder %s1491_s26, 0 }
  0x12   : > { %p60_p2 = scmp.ne.s32.totalorder %s1475_s22, %s1471_s21  ;;  %p1924_p3 = scmp.eq.s32.totalorder %s1571_s27, 0 }
  0x13   : > { %p1579_p4 = por %p55_p1, %p54_p0  ;;  %p903_p5 = scmp.ge.s32.totalorder %s1491_s26, 1 }
  0x14   : > { %p1586_p6 = por %p1924_p3, %p60_p2  ;;  %p219_p7 = scmp.lt.s32.totalorder %s1491_s26, 4 }
  0x15   : > { %s1938_s29 = scalar_select %p1579_p4, 1, 0 }
  0x16   : > { %s1939_s30 = scalar_select %p1586_p6, 1, 0 }
  0x17   : > { %p1591_p8 = pnand %p903_p5, %p219_p7  ;;  %s1493_s8 = smov [#allocation9]  }
  0x18   : > { %s233_s9 = sshll.u32 %s1493_s8, 4  ;;  %s1942_s2 = sld [smem:[#allocation26_spill]]  ;;  %s234_s9 = int_to_ptr.vmem [resolvable:$true] %s233_s9 }
  0x19   : > { %s1940_s7 = scalar_select %p1591_p8, 1, 0 }
  0x1a   : > { %p1159_p9 = pneg %p1591_p8 }
  0x1c   : > { %p1599_p10 = pnand %p1159_p9, %p1924_p3 }
  0x1e   : > { %s1247_s13 = scalar_lea.hbm %s1942_s2, 2048  ;;  %p1249_p13 = pneg %p1599_p10 }
  0x1f   : > { %p1248_p12 = scmp.ne.s32.totalorder %s1942_s2, %s1247_s13  ;;  %p1254_p2 = scmp.lt.u32.totalorder %s1247_s13, %s1942_s2 }
  0x21   : > { %p1250_p0 = pnand %p1249_p13, %p1248_p12 }
  0x23   : > { %p1251_p1 = pneg %p1250_p0 }
  0x25   : > { %p1256_p5 = pnand %p1254_p2, %p1251_p1 }
  0x27   : > { %1259 = shalt.err (!%p1256_p5)
}
  0x28   : > { %s1260_s18 = scalar_lea.vmem %s234_s9, 2048  ;;  %p1268_p11 = scmp.lt.s32.totalorder %s234_s9, %s234_s9 }
  0x29   : > { %p1261_p7 = scmp.ne.s32.totalorder %s234_s9, %s1260_s18  ;;  %p1269_p6 = scmp.lt.s32.totalorder %s1260_s18, %s1260_s18 }
  0x2b   : > { %p1263_p9 = pnand %p1261_p7, %p1249_p13  ;;  %p1270_p8 = por %p1269_p6, %p1268_p11 }
  0x2d   : > { %p1264_p3 = pneg %p1263_p9 }
  0x2f   : > { %p1271_p4 = pnand %p1270_p8, %p1264_p3 }
  0x31   : > { %1274 = shalt.err (!%p1271_p4)
}
  0x32   : > { %s1927_s19 = smov 128   ;;  %s1930_s20 = smov 8  }
  0x33   : > { %1162 = dma.hbm_to_vmem [thread:$0]  (!%p1599_p10), %s1942_s2, 2048, %s234_s9, [#allocation8], %s1927_s19, %s1927_s19, %s1930_s20  }
  0x34   : > { %s1943_s4 = sld [smem:[#allocation27_spill]] }
  0x3a   : > { %s1275_s13 = scalar_lea.hbm %s1943_s4, 64 }
  0x3b   : > { %p1276_p3 = scmp.ne.s32.totalorder %s1943_s4, %s1275_s13  ;;  %p1282_p8 = scmp.lt.u32.totalorder %s1275_s13, %s1943_s4 }
  0x3d   : > { %p1278_p4 = pnand %p1276_p3, %p1249_p13 }
  0x3f   : > { %p1279_p6 = pneg %p1278_p4 }
  0x41   : > { %p1284_p11 = pnand %p1282_p8, %p1279_p6 }
  0x43   : > { %1287 = shalt.err (!%p1284_p11)
}
  0x44   : > { %s1496_s18 = smov [#allocation12]   ;;  %s1944_s5 = sld [smem:[#allocation28_spill]] }
  0x45   : > { %1165 = dma.hbm_to_smem (!%p1599_p10), %s1943_s4, 64, %s1496_s18, [#allocation6]  }
  0x4a   : > { %s1288_s12 = scalar_lea.hbm %s1944_s5, 16 }
  0x4b   : > { %p1289_p12 = scmp.ne.s32.totalorder %s1944_s5, %s1288_s12  ;;  %p1295_p2 = scmp.lt.u32.totalorder %s1288_s12, %s1944_s5 }
  0x4d   : > { %p1291_p0 = pnand %p1289_p12, %p1249_p13 }
  0x4f   : > { %p1292_p1 = pneg %p1291_p0 }
  0x51   : > { %p1297_p5 = pnand %p1295_p2, %p1292_p1 }
  0x53   : > { %1300 = shalt.err (!%p1297_p5)
}
  0x54   : > { %s1497_s17 = smov [#allocation13]   ;;  %s37_s21 = sadd.s32 1, %s1487_s25 }
  0x55   : > { %1168 = dma.hbm_to_smem (!%p1599_p10), %s1944_s5, 16, %s1497_s17, [#allocation14]  }
  0x56   : > { %s1665_s8 = sand.u32 1, %s1479_s23   ;;  %p38_p13 = scmp.ge.s32.totalorder %s37_s21, 3 }
  0x57   : > { %s1929_s10 = sshll.u32 %s1665_s8, 7  ;;  %s939_s11 = sshll.u32 %s1487_s25, 11 }
  0x58   : > { %s1972_s21 = smov (%p38_p13, %s37_s21), 0  ;;  %s1946_s0 = sld [smem:[#allocation25_spill]] }
  0x59   : > { %1945 = sst [smem:[#allocation23_spill]] %s1972_s21  ;;  %s44_s13 = ssub.s32 %s1487_s25, %s1972_s21 }
  0x5a   : > { %s269_s16 = scalar_lea.vmem [#allocation3], %s1929_s10  ;;  %p45_p10 = scmp.eq.s32.totalorder %s44_s13, 0 }
  0x5b   : > { %s276_s17 = sshll.u32 %s269_s16, 4  ;;  %p1947_p7 = scmp.ne.s32.totalorder %s1938_s29, 0  ;;  %s1680_s17 = int_to_ptr.vmem [resolvable:$true] %s276_s17 }
  0x5c   : > { %p1948_p9 = scmp.lt.s32.totalorder %s1491_s26, 3  ;;  %s1698_s19 = scalar_lea.hbm %s1918_s1, %s939_s11 }
  0x5d   : > { %s1693_s9 = scalar_select %p45_p10, %s1479_s23, %s47_s28  }
  0x5e   : > { %s1674_s15 = scalar_lea.hbm %s1946_s0, %s939_s11  ;;  %p1686_p3 = pnand %p1948_p9, %p1947_p7 }
  0x5f   : > { %1950 = sst [smem:[#allocation24_spill]] %s1693_s9  ;;  %s266_s16 = scalar_lea.sflag [#allocation4], %s1665_s8 }
  0x60   : > { %s1949_s18 = scalar_select %p1686_p3, 1, 0 }
  0x61   : > { %s1301_s10 = scalar_lea.hbm %s1674_s15, 2048  ;;  %p1705_p6 = pneg %p1686_p3 }
  0x62   : > { %p1302_p4 = scmp.ne.s32.totalorder %s1674_s15, %s1301_s10  ;;  %s1306_s20 = scalar_lea.hbm %s1946_s0, 6144 }
  0x63   : > { %p1307_p12 = scmp.lt.u32.totalorder %s1674_s15, %s1946_s0  ;;  %p1308_p0 = scmp.lt.u32.totalorder %s1306_s20, %s1301_s10 }
  0x64   : > { %p1304_p8 = pnand %p1705_p6, %p1302_p4  ;;  %p1310_p2 = scmp.lt.u32.totalorder %s1301_s10, %s1674_s15 }
  0x65   : > { %p1309_p1 = por %p1308_p0, %p1307_p12 }
  0x66   : > { %p1305_p11 = pneg %p1304_p8 }
  0x67   : > { %p1311_p5 = por %p1310_p2, %p1309_p1 }
  0x69   : > { %p1312_p13 = pnand %p1311_p5, %p1305_p11 }
  0x6b   : > { %1315 = shalt.err (!%p1312_p13)
}
  0x6c   : > { %s1316_s11 = scalar_lea.vmem %s1680_s17, 2048  ;;  %s1498_s14 = smov [#allocation3]  }
  0x6d   : > { %p1317_p10 = scmp.ne.s32.totalorder %s1680_s17, %s1316_s11  ;;  %s1321_s13 = sshll.u32 %s1498_s14, 4  ;;  %s1322_s13 = int_to_ptr.vmem [resolvable:$false] %s1321_s13 }
  0x6e   : > { %s1323_s2 = scalar_lea.vmem %s1322_s13, 4096  ;;  %p1324_p4 = scmp.lt.s32.totalorder %s1680_s17, %s1322_s13 }
  0x6f   : > { %p1319_p7 = pnand %p1317_p10, %p1705_p6  ;;  %p1325_p8 = scmp.lt.s32.totalorder %s1323_s2, %s1316_s11 }
  0x71   : > { %p1320_p9 = pneg %p1319_p7  ;;  %p1326_p12 = por %p1325_p8, %p1324_p4 }
  0x73   : > { %p1327_p0 = pnand %p1326_p12, %p1320_p9 }
  0x75   : > { %1330 = shalt.err (!%p1327_p0)
}
  0x76   : > { %s1952_s20 = smov 8   ;;  %s1953_s10 = smov 128  }
  0x77   : > { %1172 = dma.hbm_to_vmem [thread:$0]  (!%p1686_p3), %s1674_s15, 2048, %s1680_s17, %s266_s16, %s1953_s10, %s1953_s10, %s1952_s20  }
  0x78   : > { %s1954_s28 = sshll.u32 %s1665_s8, 7  ;;  %s286_s14 = sand.u32 1, %s1491_s26  }
  0x79   : > { %s290_s12 = scalar_lea.vmem [#allocation7], %s1954_s28  ;;  %s1738_s13 = scalar_lea.sflag [#allocation8], %s286_s14 }
  0x7a   : > { %s299_s11 = sshll.u32 %s290_s12, 4  ;;  %s1331_s2 = scalar_lea.hbm %s1698_s19, 2048  ;;  %s1736_s11 = int_to_ptr.vmem [resolvable:$true] %s299_s11 }
  0x7b   : > { %p1332_p11 = scmp.ne.s32.totalorder %s1698_s19, %s1331_s2  ;;  %s1336_s5 = scalar_lea.hbm %s1918_s1, 6144 }
  0x7c   : > { %p1337_p5 = scmp.lt.u32.totalorder %s1698_s19, %s1918_s1  ;;  %p1338_p13 = scmp.lt.u32.totalorder %s1336_s5, %s1331_s2 }
  0x7d   : > { %p1334_p1 = pnand %p1332_p11, %p1705_p6  ;;  %p1340_p7 = scmp.lt.u32.totalorder %s1331_s2, %s1698_s19 }
  0x7e   : > { %p1339_p10 = por %p1338_p13, %p1337_p5 }
  0x7f   : > { %p1335_p2 = pneg %p1334_p1 }
  0x80   : > { %p1341_p9 = por %p1340_p7, %p1339_p10 }
  0x82   : > { %p1342_p4 = pnand %p1341_p9, %p1335_p2 }
  0x84   : > { %1345 = shalt.err (!%p1342_p4)
}
  0x85   : > { %s1346_s15 = scalar_lea.vmem %s1736_s11, 2048  ;;  %s1499_s0 = smov [#allocation7]  }
  0x86   : > { %p1347_p8 = scmp.ne.s32.totalorder %s1736_s11, %s1346_s15  ;;  %s1351_s4 = sshll.u32 %s1499_s0, 4  ;;  %s1352_s4 = int_to_ptr.vmem [resolvable:$false] %s1351_s4 }
  0x87   : > { %s1353_s21 = scalar_lea.vmem %s1352_s4, 4096  ;;  %p1354_p11 = scmp.lt.s32.totalorder %s1736_s11, %s1352_s4 }
  0x88   : > { %p1349_p12 = pnand %p1347_p8, %p1705_p6  ;;  %p1355_p1 = scmp.lt.s32.totalorder %s1353_s21, %s1346_s15 }
  0x8a   : > { %p1350_p0 = pneg %p1349_p12  ;;  %p1356_p5 = por %p1355_p1, %p1354_p11 }
  0x8c   : > { %p1357_p13 = pnand %p1356_p5, %p1350_p0 }
  0x8e   : > { %1360 = shalt.err (!%p1357_p13)
}
  0x8f   : > { %1175 = dma.hbm_to_vmem [thread:$0]  (!%p1686_p3), %s1698_s19, 2048, %s1736_s11, %s1738_s13, %s1953_s10, %s1953_s10, %s1952_s20  }
  0x90   : > { %s914_s5 = sshll.u32 %s1665_s8, 1  ;;  %s915_s17 = sshll.u32 %s1487_s25, 5 }
  0x91   : > { %s1770_s28 = scalar_lea.hbm %s1920_s3, %s915_s17  ;;  %s313_s12 = scalar_lea.vmem [#allocation10], %s914_s5 }
  0x92   : > { %s320_s14 = sshll.u32 %s313_s12, 4  ;;  %s310_s2 = scalar_lea.sflag [#allocation11], %s1665_s8  ;;  %s321_s14 = int_to_ptr.vmem [resolvable:$true] %s320_s14 }
  0x93   : > { %s1361_s15 = scalar_lea.hbm %s1770_s28, 32  ;;  %s1366_s10 = scalar_lea.hbm %s1920_s3, 96 }
  0x94   : > { %p1362_p2 = scmp.ne.s32.totalorder %s1770_s28, %s1361_s15  ;;  %p1367_p9 = scmp.lt.u32.totalorder %s1770_s28, %s1920_s3 }
  0x95   : > { %p1368_p4 = scmp.lt.u32.totalorder %s1366_s10, %s1361_s15  ;;  %p1370_p12 = scmp.lt.u32.totalorder %s1361_s15, %s1770_s28 }
  0x96   : > { %p1364_p10 = pnand %p1362_p2, %p1705_p6 }
  0x97   : > { %p1369_p8 = por %p1368_p4, %p1367_p9 }
  0x98   : > { %p1365_p7 = pneg %p1364_p10 }
  0x99   : > { %p1371_p0 = por %p1370_p12, %p1369_p8 }
  0x9b   : > { %p1372_p11 = pnand %p1371_p0, %p1365_p7 }
  0x9d   : > { %1375 = shalt.err (!%p1372_p11)
}
  0x9e   : > { %s1376_s8 = scalar_lea.vmem %s321_s14, 32  ;;  %s1500_s0 = smov [#allocation10]  }
  0x9f   : > { %p1377_p1 = scmp.ne.s32.totalorder %s321_s14, %s1376_s8  ;;  %s1381_s4 = sshll.u32 %s1500_s0, 4  ;;  %s1382_s4 = int_to_ptr.vmem [resolvable:$false] %s1381_s4 }
  0xa0   : > { %s1383_s21 = scalar_lea.vmem %s1382_s4, 64  ;;  %p1384_p2 = scmp.lt.s32.totalorder %s321_s14, %s1382_s4 }
  0xa1   : > { %p1379_p5 = pnand %p1377_p1, %p1705_p6  ;;  %p1385_p10 = scmp.lt.s32.totalorder %s1383_s21, %s1376_s8 }
  0xa3   : > { %p1380_p13 = pneg %p1379_p5  ;;  %p1386_p3 = por %p1385_p10, %p1384_p2 }
  0xa5   : > { %p1387_p4 = pnand %p1386_p3, %p1380_p13 }
  0xa7   : > { %1390 = shalt.err (!%p1387_p4)
}
  0xa8   : > { %p1955_p9 = scmp.ne.s32.totalorder %s1949_s18, 0  ;;  %p1956_p7 = scmp.ne.s32.totalorder %s1940_s7, 0 }
  0xa9   : > { %s331_s29 = sand.u32 (!%p1956_p7), 1, %s1475_s22   ;;  %p1957_p6 = scmp.ne.s32.totalorder (!%p1956_p7), %s1939_s30, 0 }
  0xaa   : > { %1178 = dma.hbm_to_vmem [thread:$0]  (!%p1955_p9), %s1770_s28, 32, %s321_s14, %s310_s2  }
  0xab   : > { %329 = sbr.rel (%p1956_p7) target bundleno = 768 (0x300), region = 44  ;;  %s917_s5 = sshll.u32 (!%p1956_p7), %s331_s29, 7 }
  0xac   : > { %s332_s17 = scalar_lea.sflag (!%p1956_p7), [#allocation4], %s331_s29  ;;  %s1793_s9 = scalar_lea.vmem (!%p1956_p7), [#allocation3], %s917_s5 }
  0xb2   : > { %1442 = dma.done.wait (%p1957_p6), %s332_s17, 2048  }
  0xb3   : > { %1444 = vsyncadd (%p1957_p6), %s332_s17, 4294965248  ;;  %s340_s18 = sand.u32 1, %s1571_s27   ;;  %s1800_s28 = scalar_lea.vmem [#allocation7], %s917_s5 }
  0xb4   : > { %s341_s16 = scalar_lea.sflag [#allocation8], %s340_s18 }
  0xb5   : > { %1446 = dma.done.wait (%p1957_p6), %s341_s16, 2048  }
  0xb6   : > { %1448 = vsyncadd (%p1957_p6), %s341_s16, 4294965248  ;;  %p1958_p3 = scmp.eq.s32.totalorder %s1571_s27, 0 }
  0xb8   : > { %1450 = dma.done.wait (%p1958_p3), [#allocation8], 2048   ;;  %p1959_p8 = pmov %p1958_p3 }
  0xb9   : > { %s920_s7 = sshll.u32 %s331_s29, 1  ;;  %s354_s12 = scalar_lea.sflag [#allocation11], %s331_s29 }
  0xba   : > { %1452 = vsyncadd (%p1959_p8), [#allocation8], 4294965248  ;;  %s1810_s14 = scalar_lea.vmem [#allocation10], %s920_s7 }
  0xbb   : > { %1454 = dma.done.wait (%p1957_p6), %s354_s12, 32  }
  0xbc   : > { %1456 = vsyncadd (%p1957_p6), %s354_s12, 4294967264  ;;  %p1960_p12 = pmov %p1958_p3 }
  0xbd   : > { %p1961_p0 = pmov %p1958_p3 }
  0xbe   : > { %1458 = dma.done.wait (%p1960_p12), [#allocation6], 64  }
  0xbf   : > { %1460 = vsyncadd (%p1961_p0), [#allocation6], 4294967232  ;;  %p1962_p11 = pmov %p1961_p0 }
  0xc0   : > { %p1963_p1 = pmov %p1961_p0 }
  0xc1   : > { %1462 = dma.done.wait (%p1962_p11), [#allocation14], 16  }
  0xc2   : > { %1464 = vsyncadd (%p1963_p1), [#allocation14], 4294967280 }
  0xc3   : > { %370 = sfence }
  0xc4   : > { %v417_v0 = vld [vmem:[%s1800_s28] sm:$0xff]  ;;  %v418_v1 = vld [vmem:[%s1800_s28 + $0x8] sm:$0xff]  ;;  %v419_v2 = vld [vmem:[%s1800_s28 + $0x10] sm:$0xff]  ;;  %v1501_v40 = vmov 0.0|0.0   ;;  %vm1502_vm0 = vmmov 0   ;;  %v1503_v41 = vmov 0.0  }
  0xc5   : > { %v1081_v3 = vpack.c.bf16 %v418_v1, %v417_v0  ;;  %v420_v4 = vld [vmem:[%s1800_s28 + $0x18] sm:$0xff]  ;;  %v401_v6 = vld [vmem:[%s1793_s9] sm:$0xff]  ;;  %v422_v8 = vld [vmem:[%s1800_s28 + $0x28] sm:$0xff]  ;;  %1113 = vmatprep.subr.bf16.mxu1 %v1501_v40  ;;  %1078 = vmatprep.mubr.msk.f32.mxu1 %vm1502_vm0, %v1503_v41  ;;  %s923_s30 = sshll.u32 %s1483_s24, 1  ;;  %p924_p5 = scmp.ne.s32.totalorder %s1483_s24, 2 }
  0xc6   : > { %v1085_v5 = vpack.c.bf16 %v420_v4, %v419_v2  ;;  %v421_v7 = vld [vmem:[%s1800_s28 + $0x20] sm:$0xff]  ;;  %1022 = vmatprep.mubr.f32.mxu0 %v401_v6  ;;  %v423_v10 = vld [vmem:[%s1800_s28 + $0x30] sm:$0xff]  ;;  %v424_v11 = vld [vmem:[%s1800_s28 + $0x38] sm:$0xff]  ;;  %s682_s2 = scalar_lea.vmem [#allocation2], %s923_s30  ;;  %s688_s15 = sld [smem:[#allocation13]] (!%p924_p5) }
  0xc7   : > { %1082 = vmatprep.subr.bf16.mxu0 %v1081_v3  ;;  %v1089_v9 = vpack.c.bf16 %v422_v8, %v421_v7  ;;  %v1093_v12 = vpack.c.bf16 %v424_v11, %v423_v10  ;;  %v425_v13 = vld [vmem:[%s1800_s28 + $0x40] sm:$0xff]  ;;  %v426_v14 = vld [vmem:[%s1800_s28 + $0x48] sm:$0xff]  ;;  %v427_v16 = vld [vmem:[%s1800_s28 + $0x50] sm:$0xff]  ;;  %s690_s19 = sld [smem:[#allocation12]] (!%p924_p5)  ;;  %s925_s20 = sld [smem:[#allocation12 + $0x1]] (!%p924_p5) }
  0xc8   : > { %1084 = vmatpush3.bf16.xpose.msra.mxu0 %v1081_v3  ;;  %v1097_v15 = vpack.c.bf16 %v426_v14, %v425_v13  ;;  %v428_v17 = vld [vmem:[%s1800_s28 + $0x58] sm:$0xff]  ;;  %v429_v19 = vld [vmem:[%s1800_s28 + $0x60] sm:$0xff]  ;;  %v430_v20 = vld [vmem:[%s1800_s28 + $0x68] sm:$0xff]  ;;  %s926_s10 = sld [smem:[#allocation12 + $0x2]] (!%p924_p5)  ;;  %s1867_s11 = sld [smem:[#allocation13 + $0x1]] (!%p924_p5) }
  0xc9   : > { %1086 = vmatprep.subr.bf16.mxu0 %v1085_v5  ;;  %v1101_v18 = vpack.c.bf16 %v428_v17, %v427_v16  ;;  %v1105_v21 = vpack.c.bf16 %v430_v20, %v429_v19  ;;  %v431_v22 = vld [vmem:[%s1800_s28 + $0x70] sm:$0xff]  ;;  %v432_v23 = vld [vmem:[%s1800_s28 + $0x78] sm:$0xff]  ;;  %v402_v25 = vld [vmem:[%s1793_s9 + $0x8] sm:$0xff]  ;;  %s928_s13 = sld [smem:[#allocation12 + $0x80]] (!%p924_p5)  ;;  %s929_s8 = sld [smem:[#allocation12 + $0x81]] (!%p924_p5) }
  0xca   : > { %v1109_v24 = vpack.c.bf16 %v432_v23, %v431_v22  ;;  %v403_v26 = vld [vmem:[%s1793_s9 + $0x10] sm:$0xff]  ;;  %v404_v27 = vld [vmem:[%s1793_s9 + $0x18] sm:$0xff]  ;;  %v405_v28 = vld [vmem:[%s1793_s9 + $0x20] sm:$0xff]  ;;  %s930_s0 = sld [smem:[#allocation12 + $0x82]] (!%p924_p5)  ;;  %s932_s21 = sld [smem:[#allocation12 + $0x100]] (!%p924_p5) }
  0xcb   : > { %v406_v29 = vld [vmem:[%s1793_s9 + $0x28] sm:$0xff]  ;;  %v407_v30 = vld [vmem:[%s1793_s9 + $0x30] sm:$0xff]  ;;  %v408_v31 = vld [vmem:[%s1793_s9 + $0x38] sm:$0xff]  ;;  %s1869_s4 = sld [smem:[#allocation13 + $0x2]] (!%p924_p5)  ;;  %s1871_s29 = sld [smem:[#allocation12 + $0x101]] (!%p924_p5) }
  0xcc   : > { %v409_v32 = vld [vmem:[%s1793_s9 + $0x40] sm:$0xff]  ;;  %v410_v33 = vld [vmem:[%s1793_s9 + $0x48] sm:$0xff]  ;;  %v411_v34 = vld [vmem:[%s1793_s9 + $0x50] sm:$0xff]  ;;  %s934_s24 = sld [smem:[#allocation12 + $0x102]] (!%p924_p5) }
  0xcd   : > { %v412_v35 = vld [vmem:[%s1793_s9 + $0x58] sm:$0xff]  ;;  %v413_v36 = vld [vmem:[%s1793_s9 + $0x60] sm:$0xff]  ;;  %v414_v37 = vld [vmem:[%s1793_s9 + $0x68] sm:$0xff] }
  0xce   : > { %v415_v38 = vld [vmem:[%s1793_s9 + $0x70] sm:$0xff]  ;;  %v416_v39 = vld [vmem:[%s1793_s9 + $0x78] sm:$0xff]  ;;  %v579_v42 = vld [vmem:[#allocation9 + $0x8] sm:$0xff] }
  0xcf   : > { %v578_v43 = vld [vmem:[#allocation9] sm:$0xff]  ;;  %v581_v48 = vld [vmem:[#allocation9 + $0x18] sm:$0xff]  ;;  %v580_v49 = vld [vmem:[#allocation9 + $0x10] sm:$0xff] }
  0xd0   : > { %1088 = vmatpush3.bf16.xpose.msra.mxu0 %v1085_v5  ;;  %v583_v55 = vld [vmem:[#allocation9 + $0x28] sm:$0xff]  ;;  %v582_v56 = vld [vmem:[#allocation9 + $0x20] sm:$0xff]  ;;  %v585_v62 = vld [vmem:[#allocation9 + $0x38] sm:$0xff] }
  0xd1   : > { %1090 = vmatprep.subr.bf16.mxu0 %v1089_v9  ;;  %v584_v63 = vld [vmem:[#allocation9 + $0x30] sm:$0xff]  ;;  %v587_v5 = vld [vmem:[#allocation9 + $0x48] sm:$0xff]  ;;  %v586_v6 = vld [vmem:[#allocation9 + $0x40] sm:$0xff] }
  0xd2   : > { %v588_v13 = vld [vmem:[#allocation9 + $0x50] sm:$0xff]  ;;  %v591_v19 = vld [vmem:[#allocation9 + $0x68] sm:$0xff]  ;;  %v590_v20 = vld [vmem:[#allocation9 + $0x60] sm:$0xff] }
  0xd8   : > { %1092 = vmatpush3.bf16.xpose.msra.mxu0 %v1089_v9 }
  0xd9   : > { %1094 = vmatprep.subr.bf16.mxu0 %v1093_v12 }
  0xe0   : > { %1096 = vmatpush3.bf16.xpose.msra.mxu0 %v1093_v12  ;;  %v589_v12 = vld [vmem:[#allocation9 + $0x58] sm:$0xff] }
  0xe1   : > { %1098 = vmatprep.subr.bf16.mxu0 %v1097_v15 }
  0xe8   : > { %1100 = vmatpush3.bf16.xpose.msra.mxu0 %v1097_v15 }
  0xe9   : > { %1102 = vmatprep.subr.bf16.mxu0 %v1101_v18 }
  0xf0   : > { %1104 = vmatpush3.bf16.xpose.msra.mxu0 %v1101_v18 }
  0xf1   : > { %1106 = vmatprep.subr.bf16.mxu0 %v1105_v21 }
  0xf8   : > { %1108 = vmatpush3.bf16.xpose.msra.mxu0 %v1105_v21 }
  0xf9   : > { %1110 = vmatprep.subr.bf16.mxu0 %v1109_v24 }
 0x100   : > { %1112 = vmatpush3.bf16.xpose.msra.mxu0 %v1109_v24 }
 0x107   : > { %1023 = vmatmul.mubr.f32.vlgmr.msra.gmra.mrb[0].mxu0 %v402_v25 }
 0x108   : > { %1025 = vmatprep.mubr.f32.mxu0 %v403_v26  ;;  %v593_v26 = vld [vmem:[#allocation9 + $0x78] sm:$0xff] }
 0x10b   : > { %1026 = vmatmul.mubr.f32.gmra.mrb[2].mxu0 %v404_v27  ;;  %v592_v27 = vld [vmem:[#allocation9 + $0x70] sm:$0xff] }
 0x10c   : > { %1028 = vmatprep.mubr.f32.mxu0 %v405_v28 }
 0x10f   : > { %1029 = vmatmul.mubr.f32.gmra.mrb[4].mxu0 %v406_v29 }
 0x110   : > { %1031 = vmatprep.mubr.f32.mxu0 %v407_v30 }
 0x113   : > { %1032 = vmatmul.mubr.f32.gmra.mrb[6].mxu0 %v408_v31 }
 0x114   : > { %1034 = vmatprep.mubr.f32.mxu0 %v409_v32 }
 0x117   : > { %1035 = vmatmul.mubr.f32.gmra.mrb[8].mxu0 %v410_v33 }
 0x118   : > { %1037 = vmatprep.mubr.f32.mxu0 %v411_v34  ;;  %v610_v34 = vld [vmem:[%s1810_s14] sm:$0x3] }
 0x11b   : > { %1038 = vmatmul.mubr.f32.gmra.mrb[10].mxu0 %v412_v35 }
 0x11c   : > { %1040 = vmatprep.mubr.f32.mxu0 %v413_v36 }
 0x11f   : > { %1041 = vmatmul.mubr.f32.gmra.mrb[12].mxu0 %v414_v37 }
 0x120   : > { %1043 = vmatprep.mubr.f32.mxu0 %v415_v38 }
 0x123   : > { %1044 = vmatmul.mubr.f32.gmra.mrb[14].mxu0 %v416_v39  ;;  %v689_v39 = vstv (!%p924_p5), %s688_s15 }
 0x1da   : > { %v1024_v44 = vpop.f32.mrb[0].mxu0 }
 0x1db   : > { %v595_v45 = vmul.f32 %v1024_v44, %v579_v42  ;;  %v499_v46 = vpop.f32.mrb[1].mxu0  ;;  %v698_v44 = vstv (!%p924_p5), %s925_s20 }
 0x1dc   : > { %v594_v47 = vmul.f32 %v578_v43, %v499_v46 }
 0x1de   : > { %v1027_v50 = vpop.f32.mrb[2].mxu0  ;;  %v1114_v51 = vpack.c.bf16 %v595_v45, %v594_v47  ;;  %v704_v45 = vstv (!%p924_p5), %s926_s10 }
 0x1df   : > { %v597_v52 = vmul.f32 %v1027_v50, %v581_v48  ;;  %v509_v53 = vpop.f32.mrb[3].mxu0  ;;  %v709_v48 = vstv (!%p924_p5), %s1867_s11 }
 0x1e0   : > { %v596_v54 = vmul.f32 %v580_v49, %v509_v53  ;;  %1115 = vmatpush3.bf16.msra.mxu1 %v1114_v51  ;;  %v712_v49 = vstv (!%p924_p5), %s928_s13 }
 0x1e1   : > { %1116 = vmatprep.subr.bf16.mxu1 %v1501_v40 }
 0x1e2   : > { %v1117_v57 = vpack.c.bf16 %v597_v52, %v596_v54  ;;  %v1030_v58 = vpop.f32.mrb[4].mxu0  ;;  %v717_v54 = vstv (!%p924_p5), %s929_s8 }
 0x1e3   : > { %v599_v59 = vmul.f32 %v1030_v58, %v583_v55  ;;  %v519_v60 = vpop.f32.mrb[5].mxu0  ;;  %v728_v58 = vstv (!%p924_p5), %s1869_s4 }
 0x1e4   : > { %v598_v61 = vmul.f32 %v582_v56, %v519_v60  ;;  %1118 = vmatpush3.bf16.msra.mxu1 %v1117_v57  ;;  %v722_v57 = vstv (!%p924_p5), %s930_s0 }
 0x1e5   : > { %1119 = vmatprep.subr.bf16.mxu1 %v1501_v40 }
 0x1e6   : > { %v1120_v0 = vpack.c.bf16 %v599_v59, %v598_v61  ;;  %v1033_v1 = vpop.f32.mrb[6].mxu0 }
 0x1e7   : > { %v601_v2 = vmul.f32 %v1033_v1, %v585_v62  ;;  %v529_v3 = vpop.f32.mrb[7].mxu0 }
 0x1e8   : > { %v600_v4 = vmul.f32 %v584_v63, %v529_v3  ;;  %1121 = vmatpush3.bf16.msra.mxu1 %v1120_v0  ;;  %v731_v63 = vstv (!%p924_p5), %s932_s21  ;;  %v741_v3 = vstv (!%p924_p5), %s934_s24 }
 0x1e9   : > { %1122 = vmatprep.subr.bf16.mxu1 %v1501_v40 }
 0x1ea   : > { %v1123_v7 = vpack.c.bf16 %v601_v2, %v600_v4  ;;  %v1036_v8 = vpop.f32.mrb[8].mxu0  ;;  %v736_v2 = vstv (!%p924_p5), %s1871_s29 }
 0x1eb   : > { %v603_v9 = vmul.f32 %v1036_v8, %v587_v5  ;;  %v539_v10 = vpop.f32.mrb[9].mxu0 }
 0x1ec   : > { %v602_v11 = vmul.f32 %v586_v6, %v539_v10  ;;  %1124 = vmatpush3.bf16.msra.mxu1 %v1123_v7 }
 0x1ed   : > { %1125 = vmatprep.subr.bf16.mxu1 %v1501_v40 }
 0x1ee   : > { %v1126_v14 = vpack.c.bf16 %v603_v9, %v602_v11  ;;  %v1039_v15 = vpop.f32.mrb[10].mxu0 }
 0x1ef   : > { %v605_v16 = vmul.f32 %v1039_v15, %v589_v12  ;;  %v549_v17 = vpop.f32.mrb[11].mxu0 }
 0x1f0   : > { %v604_v18 = vmul.f32 %v588_v13, %v549_v17  ;;  %1127 = vmatpush3.bf16.msra.mxu1 %v1126_v14 }
 0x1f1   : > { %1128 = vmatprep.subr.bf16.mxu1 %v1501_v40 }
 0x1f2   : > { %v1129_v21 = vpack.c.bf16 %v605_v16, %v604_v18  ;;  %v1042_v22 = vpop.f32.mrb[12].mxu0 }
 0x1f3   : > { %v607_v23 = vmul.f32 %v1042_v22, %v591_v19  ;;  %v559_v24 = vpop.f32.mrb[13].mxu0 }
 0x1f4   : > { %v606_v25 = vmul.f32 %v590_v20, %v559_v24  ;;  %1130 = vmatpush3.bf16.msra.mxu1 %v1129_v21 }
 0x1f5   : > { %1131 = vmatprep.subr.bf16.mxu1 %v1501_v40 }
 0x1f6   : > { %v1132_v28 = vpack.c.bf16 %v607_v23, %v606_v25  ;;  %v1045_v29 = vpop.f32.mrb[14].mxu0 }
 0x1f7   : > { %v609_v30 = vmul.f32 %v1045_v29, %v593_v26  ;;  %v569_v31 = vpop.f32.mrb[15].mxu0 }
 0x1f8   : > { %v608_v32 = vmul.f32 %v592_v27, %v569_v31  ;;  %1133 = vmatpush3.bf16.msra.mxu1 %v1132_v28 }
 0x1f9   : > { %1134 = vmatprep.subr.bf16.mxu1 %v1501_v40  ;;  %v692_v40 = vstv (!%p924_p5), %s690_s19 }
 0x1fa   : > { %v1135_v33 = vpack.c.bf16 %v609_v30, %v608_v32 }
 0x1fc   : > { %1136 = vmatpush3.bf16.msra.mxu1 %v1135_v33 }
 0x1ff   : > { %1079 = vmatmul.mubr.f32.vlgmr.msra.gmra.mrb[0].mxu1 %v610_v34 }
 0x2cd   : > { %687 = sbr.rel (%p924_p5) target bundleno = 742 (0x2e6), region = 72 }
 0x2d2   : > { %v677_v35 = vpop.f32.mrb[0].mxu1 }
 0x2d3   : > { %683 = vst [vmem:[%s682_s2] sm:$0x3] %v677_v35  ;;  %v1080_v36 = vpop.f32.mrb[1].mxu1 }
 0x2da   : > { %v691_v37 = vld [vmem:[#allocation2] sm:$0x3]  ;;  %v697_v38 = vld [vmem:[#allocation2 + $0x2] sm:$0x3]  ;;  %v703_v41 = vld [vmem:[#allocation2 + $0x4] sm:$0x3] }
 0x2db   : > { %v711_v42 = vld [vmem:[#allocation2] sm:$0x3]  ;;  %v693_v43 = vmul.f32 %v692_v40, %v691_v37  ;;  %v716_v46 = vld [vmem:[#allocation2 + $0x2] sm:$0x3]  ;;  %v699_v47 = vmul.f32 %v698_v44, %v697_v38  ;;  %v721_v50 = vld [vmem:[#allocation2 + $0x4] sm:$0x3]  ;;  %v705_v52 = vmul.f32 %v704_v45, %v703_v41 }
 0x2dc   : > { %v713_v53 = vmul.f32 %v712_v49, %v711_v42  ;;  %v730_v55 = vld [vmem:[#allocation2] sm:$0x3]  ;;  %v718_v56 = vmul.f32 %v717_v54, %v716_v46  ;;  %v735_v59 = vld [vmem:[#allocation2 + $0x2] sm:$0x3]  ;;  %v723_v62 = vmul.f32 %v722_v57, %v721_v50  ;;  %v740_v0 = vld [vmem:[#allocation2 + $0x4] sm:$0x3] }
 0x2dd   : > { %v694_v51 = vadd.f32 %v693_v43, %v689_v39  ;;  %v732_v1 = vmul.f32 %v731_v63, %v730_v55  ;;  %v737_v6 = vmul.f32 %v736_v2, %v735_v59  ;;  %v742_v8 = vmul.f32 %v741_v3, %v740_v0 }
 0x2de   : > { %v714_v61 = vadd.f32 %v713_v53, %v709_v48 }
 0x2df   : > { %v700_v60 = vadd.f32 %v699_v47, %v694_v51  ;;  %v733_v7 = vadd.f32 %v732_v1, %v728_v58 }
 0x2e0   : > { %v719_v5 = vadd.f32 %v718_v56, %v714_v61 }
 0x2e1   : > { %v706_v4 = vadd.f32 %v705_v52, %v700_v60  ;;  %v738_v10 = vadd.f32 %v737_v6, %v733_v7 }
 0x2e2   : > { %v724_v9 = vadd.f32 %v723_v62, %v719_v5 }
 0x2e3   : > { %707 = vst [vmem:[#allocation15] sm:$0x3] %v706_v4  ;;  %v743_v11 = vadd.f32 %v742_v8, %v738_v10 }
 0x2e4   : > { %726 = vst [vmem:[#allocation15 + $0x2] sm:$0x3] %v724_v9 }
 0x2e5   : > { %745 = vst [vmem:[#allocation15 + $0x4] sm:$0x3] %v743_v11 }
 0x2e6 PF: > { %p1186_p13 = scmp.eq.s32.totalorder %s1571_s27, 2  ;;  %s1504_s5 = smov [#allocation15]  }
 0x2e7   : > { %s754_s17 = sshll.u32 %s1504_s5, 4  ;;  %s755_s17 = int_to_ptr.vmem [resolvable:$true] %s754_s17 }
 0x2e8   : > { %s1391_s9 = scalar_lea.vmem %s755_s17, 96  ;;  %p1398_p9 = scmp.lt.s32.totalorder %s755_s17, %s755_s17 }
 0x2e9   : > { %p1392_p2 = scmp.ne.s32.totalorder %s755_s17, %s1391_s9  ;;  %p1399_p7 = scmp.lt.s32.totalorder %s1391_s9, %s1391_s9 }
 0x2eb   : > { %p1393_p10 = pnand %p1392_p2, %p1186_p13  ;;  %p1400_p6 = por %p1399_p7, %p1398_p9 }
 0x2ed   : > { %p1394_p4 = pneg %p1393_p10 }
 0x2ef   : > { %p1401_p3 = pnand %p1400_p6, %p1394_p4 }
 0x2f1   : > { %1404 = shalt.err (!%p1401_p3)
}
 0x2f2   : > { %s1405_s28 = scalar_lea.hbm %s1923_s6, 96 }
 0x2f3   : > { %p1406_p8 = scmp.ne.s32.totalorder %s1923_s6, %s1405_s28  ;;  %p1411_p11 = scmp.lt.u32.totalorder %s1405_s28, %s1923_s6 }
 0x2f5   : > { %p1407_p12 = pnand %p1406_p8, %p1186_p13 }
 0x2f7   : > { %p1408_p0 = pneg %p1407_p12 }
 0x2f9   : > { %p1413_p1 = pnand %p1411_p11, %p1408_p0 }
 0x2fb   : > { %1416 = shalt.err (!%p1413_p1)
}
 0x2fc   : > { %s1505_s2 = smov 32   ;;  %s1506_s15 = smov 2  }
 0x2fd   : > { %1156 = dma.vmem_to_hbm [thread:$0]  (%p1186_p13), %s755_s17, 96, %s1923_s6, [#allocation5], %s1505_s2, %s1505_s2, %s1506_s15  }
 0x2fe   : > { %1466 = dma.done.wait (%p1186_p13), [#allocation5], 96  }
 0x2ff   : > { %1468 = vsyncadd (%p1186_p13), [#allocation5], 4294967200 }
 0x300 PF: > { %s28_s26 = sadd.s32 1, %s1491_s26   ;;  %s1964_s10 = sld [smem:[#allocation24_spill]] }
 0x301   : > { %p25_p5 = scmp.ge.s32.totalorder %s28_s26, 5   ;;  %s1965_s11 = sld [smem:[#allocation23_spill]] }
 0x302   : > { %s1966_s21 = smov %s1475_s22  ;;  %s1967_s22 = smov %s1479_s23 }
 0x303   : > { %s1969_s24 = smov %s1487_s25  ;;  %27 = sbr.rel (!%p25_p5) target bundleno = 16 (0x10), region = 131 }
 0x306   : > { %s1968_s23 = smov %s1964_s10 }
 0x307   : > { %s1970_s25 = smov %s1965_s11 }
 0x30a   :  { %770 = vsyncpa [#allocation4], 1 }
 0x30b   :  { %772 = vsyncpa [#allocation4 + $0x1], 1 }
 0x30c   :  { %773 = vsyncpa [#allocation8], 1 }
 0x30d   :  { %775 = vsyncpa [#allocation8 + $0x1], 1 }
 0x30e   :  { %776 = vsyncpa [#allocation11], 1 }
 0x30f   :  { %778 = vsyncpa [#allocation11 + $0x1], 1 }
 0x310   :  { %779 = vsyncpa [#allocation5], 1 }
 0x311   :  { %781 = vsyncpa [#allocation5 + $0x1], 1 }
 0x312   :  { %782 = vsyncpa [#allocation6], 1 }
 0x313   :  { %784 = vsyncpa [#allocation6 + $0x1], 1 }
 0x314   :  { %785 = vsyncpa [#allocation14], 1 }

</bundles_post_ra>
